<compile_context>
chip_gen: v6e
topology: v6e:2x2x1
jax: 0.10.0
libtpu: 0.0.40
codegen_flags: <defaults>
</compile_context>

<pallas_src>
import jax
import jax.numpy as jnp
from jax import lax
from jax.experimental import pallas as pl
from jax.experimental.pallas import tpu as pltpu


def _round_up(x, m):
    return ((x + m - 1) // m) * m


def bce_dice_loss(inp, target, loss_weights=(0.5, 0.5), smooth=1.0, eps=1e-5,
                  max_block_elems=512 * 1024):
    """inp: (N,1,H,W) logits; target: (N,H,W) binary ground truth."""
    N, C, H, W = inp.shape
    assert C == 1, "BCEDiceLoss expects single-channel logits (N,1,H,W)"
    total = N * H * W

    # ---- copy-free 2-D view of the flattened data ---------------------------
    lane = None
    for cand in (512, 256, 128):
        if total % cand == 0:
            lane = cand
            break
    if lane is None:
        rows, lane = N * H, W            # natural view; W need not be 128-aligned
    else:
        rows = total // lane             # fully lane-dense view
    x2 = inp.reshape(rows, lane)         # contiguous reshape: no HBM copy
    t2 = target.reshape(rows, lane)

    # ---- tiling --------------------------------------------------------------
    SLAB = 128                                                  # rows per inner slab
    target_rows = max(SLAB, ((max_block_elems // lane) // SLAB) * SLAB)
    tile_r = max(SLAB, min(_round_up(rows, SLAB), target_rows))
    nblocks = -(-rows // tile_r)
    rows_last = rows - (nblocks - 1) * tile_r                   # valid rows in last block
    partial = rows_last != tile_r
    n_slabs_full = tile_r // SLAB
    n_slabs_tail = -(-rows_last // SLAB)

    def kernel(x_ref, t_ref, o_ref, acc_bce, acc_num, acc_den):
        j = pl.program_id(0)

        @pl.when(j == 0)
        def _init():
            acc_bce[...] = jnp.zeros_like(acc_bce)
            acc_num[...] = jnp.zeros_like(acc_num)
            acc_den[...] = jnp.zeros_like(acc_den)

        def fold(v):
            # (SLAB, lane) -> (8, lane): pure VPU vreg adds, no per-step XLU reduce.
            return jnp.sum(v.reshape(SLAB // 8, 8, lane), axis=0)

        def accumulate(n_slabs, valid_rows):
            # valid_rows: static int (masked ragged tail) or None (all rows valid).
            if valid_rows is not None:
                local_row = lax.broadcasted_iota(jnp.int32, (SLAB, lane), 0)

            def body(s, carry):
                r0 = pl.multiple_of(s * SLAB, SLAB)
                xs = x_ref[pl.ds(r0, SLAB), :].astype(jnp.float32)
                ts = t_ref[pl.ds(r0, SLAB), :].astype(jnp.float32)
                if valid_rows is not None:
                    m = (s * SLAB + local_row) < valid_rows
                    # Neutral fill: logit=-1e4, target=0 -> exp underflows to 0,
                    # so BCE, p*t and p+t are all exactly 0 for masked rows.
                    xs = jnp.where(m, xs, -1e4)
                    ts = jnp.where(m, ts, 0.0)
                e = jnp.exp(-jnp.abs(xs))               # shared: stable BCE + sigmoid
                bce = jnp.maximum(xs, 0.0) - xs * ts + jnp.log1p(e)
                r = 1.0 / (1.0 + e)
                p = jnp.where(xs >= 0.0, r, e * r)      # sigmoid(xs), exact
                acc_bce[...] += fold(bce)
                acc_num[...] += fold(p * ts)
                acc_den[...] += fold(p + ts)
                return carry

            lax.fori_loop(0, n_slabs, body, 0)

        if not partial:
            accumulate(n_slabs_full, None)
        elif nblocks == 1:
            accumulate(n_slabs_tail, rows_last)
        else:
            @pl.when(j < nblocks - 1)
            def _full_blocks():
                accumulate(n_slabs_full, None)

            @pl.when(j == nblocks - 1)
            def _tail_block():
                accumulate(n_slabs_tail, rows_last)

        @pl.when(j == nblocks - 1)
        def _finalize():
            s_bce = jnp.sum(acc_bce[...])
            s_num = jnp.sum(acc_num[...])
            s_den = jnp.sum(acc_den[...])
            row = lax.broadcasted_iota(jnp.int32, o_ref.shape, 0)
            col = lax.broadcasted_iota(jnp.int32, o_ref.shape, 1)
            out = jnp.where((row == 0) & (col == 0), s_bce, 0.0)
            out = jnp.where((row == 0) & (col == 1), s_num, out)
            out = jnp.where((row == 0) & (col == 2), s_den, out)
            o_ref[...] = out

    partials = pl.pallas_call(
        kernel,
        out_shape=jax.ShapeDtypeStruct((8, 128), jnp.float32),
        grid_spec=pltpu.PrefetchScalarGridSpec(
            num_scalar_prefetch=0,
            grid=(nblocks,),
            in_specs=[
                pl.BlockSpec((tile_r, lane), lambda j: (j, 0)),
                pl.BlockSpec((tile_r, lane), lambda j: (j, 0)),
            ],
            out_specs=pl.BlockSpec((8, 128), lambda j: (0, 0)),
            scratch_shapes=[
                pltpu.VMEM((8, lane), jnp.float32),
                pltpu.VMEM((8, lane), jnp.float32),
                pltpu.VMEM((8, lane), jnp.float32),
            ],
        ),
        compiler_params=pltpu.CompilerParams(
            dimension_semantics=("arbitrary",),
            vmem_limit_bytes=32 * 1024 * 1024,
        ),
    )(x2, t2)

    s_bce = partials[0, 0]
    s_num = partials[0, 1]
    s_den = partials[0, 2]

    w_bce, w_dice = float(loss_weights[0]), float(loss_weights[1])
    bce_mean = s_bce / float(total)
    dice_loss = 1.0 - (2.0 * s_num + float(smooth)) / (s_den + float(eps) + float(smooth))
    return w_bce * bce_mean + w_dice * dice_loss


def _reference(inp, target, loss_weights=(0.5, 0.5), smooth=1.0, eps=1e-5):
    x = inp[:, 0].astype(jnp.float32)
    t = target.astype(jnp.float32)
    bce = jnp.mean(jnp.maximum(x, 0.0) - x * t + jnp.log1p(jnp.exp(-jnp.abs(x))))
    p = jax.nn.sigmoid(x)
    num = jnp.sum(p * t)
    den = jnp.sum(p + t)
    dice = 1.0 - (2.0 * num + smooth) / (den + eps + smooth)
    return loss_weights[0] * bce + loss_weights[1] * dice


if __name__ == "__main__":
    key = jax.random.PRNGKey(0)
    k1, k2 = jax.random.split(key)

    N, H, W = 2, 16, 16
    logits = jax.random.normal(k1, (N, 1, H, W), dtype=jnp.float32) * 2.0
    target = (jax.random.uniform(k2, (N, H, W)) > 0.5).astype(jnp.float32)

    loss = jax.block_until_ready(bce_dice_loss(logits, target))

    ref = _reference(logits, target)
    assert jnp.allclose(loss, ref, atol=1e-5, rtol=1e-5), (loss, ref)

    print("KERNEL_OK")
</pallas_src>

<mosaic_0001>
module attributes {stable_mosaic.version = 11 : i64} {
  func.func @kernel(%arg0: i32, %arg1: memref<128x512xf32, #tpu.memory_space<vmem>>, %arg2: memref<128x512xf32, #tpu.memory_space<vmem>>, %arg3: memref<8x128xf32, #tpu.memory_space<vmem>>, %arg4: memref<8x512xf32, #tpu.memory_space<vmem>>, %arg5: memref<8x512xf32, #tpu.memory_space<vmem>>, %arg6: memref<8x512xf32, #tpu.memory_space<vmem>>) attributes {dimension_semantics = [#tpu.dimension_semantics<arbitrary>], iteration_bounds = array<i64: 1>, scalar_prefetch = 0 : i64, scratch_operands = 3 : i64, tpu.core_type = #tpu.core_type<tc>, window_params = [{transform_indices = @transform_0, window_bounds = array<i64: 128, 512>}, {transform_indices = @transform_1, window_bounds = array<i64: 128, 512>}, {pipeline_mode = #tpu.pipeline_mode<synchronous>, transform_indices = @transform_2, window_bounds = array<i64: 8, 128>}]} {
    %c0_i32 = arith.constant 0 : i32
    %0 = arith.cmpi eq, %arg0, %c0_i32 : i32
    %1 = arith.extui %0 : i1 to i32
    %c0_i32_0 = arith.constant 0 : i32
    %2 = arith.cmpi ne, %1, %c0_i32_0 : i32
    scf.if %2 {
      %cst_28 = arith.constant 0.000000e+00 : f32
      %57 = vector.broadcast %cst_28 : f32 to vector<8x512xf32>
      %c0_29 = arith.constant 0 : index
      %c0_30 = arith.constant 0 : index
      %58 = vector.load %arg4[%c0_29, %c0_30] : memref<8x512xf32, #tpu.memory_space<vmem>>, vector<8x512xf32>
      tpu.vector_store %arg4[%c0_29, %c0_30], %57 {strides = array<i32>} : memref<8x512xf32, #tpu.memory_space<vmem>>, vector<8x512xf32>,
      %cst_31 = arith.constant 0.000000e+00 : f32
      %59 = vector.broadcast %cst_31 : f32 to vector<8x512xf32>
      %c0_32 = arith.constant 0 : index
      %c0_33 = arith.constant 0 : index
      %60 = vector.load %arg5[%c0_32, %c0_33] : memref<8x512xf32, #tpu.memory_space<vmem>>, vector<8x512xf32>
      tpu.vector_store %arg5[%c0_32, %c0_33], %59 {strides = array<i32>} : memref<8x512xf32, #tpu.memory_space<vmem>>, vector<8x512xf32>,
      %cst_34 = arith.constant 0.000000e+00 : f32
      %61 = vector.broadcast %cst_34 : f32 to vector<8x512xf32>
      %c0_35 = arith.constant 0 : index
      %c0_36 = arith.constant 0 : index
      %62 = vector.load %arg6[%c0_35, %c0_36] : memref<8x512xf32, #tpu.memory_space<vmem>>, vector<8x512xf32>
      tpu.vector_store %arg6[%c0_35, %c0_36], %61 {strides = array<i32>} : memref<8x512xf32, #tpu.memory_space<vmem>>, vector<8x512xf32>,
    } else {
    }
    %3 = tpu.iota {dimensions = array<i32: 0>} : vector<128x512xi32>
    %c0_i32_1 = arith.constant 0 : i32
    %c128_i32 = arith.constant 128 : i32
    %4 = arith.muli %c0_i32_1, %c128_i32 : i32
    %5 = tpu.assume_multiple %4, 128 : i32
    %6 = arith.index_cast %5 : i32 to index
    %c0 = arith.constant 0 : index
    %7 = vector.load %arg1[%6, %c0] : memref<128x512xf32, #tpu.memory_space<vmem>>, vector<128x512xf32>
    %8 = arith.index_cast %5 : i32 to index
    %c0_2 = arith.constant 0 : index
    %9 = vector.load %arg2[%8, %c0_2] : memref<128x512xf32, #tpu.memory_space<vmem>>, vector<128x512xf32>
    %c128_i32_3 = arith.constant 128 : i32
    %10 = arith.muli %c0_i32_1, %c128_i32_3 : i32
    %11 = vector.broadcast %10 : i32 to vector<128x512xi32>
    %12 = arith.addi %11, %3 : vector<128x512xi32>
    %c1_i32 = arith.constant 1 : i32
    %13 = vector.broadcast %c1_i32 : i32 to vector<128x512xi32>
    %14 = arith.cmpi slt, %12, %13 : vector<128x512xi32>
    %cst = arith.constant -1.000000e+04 : f32
    %15 = vector.broadcast %cst : f32 to vector<128x512xf32>
    %16 = arith.select %14, %7, %15 : vector<128x512xi1>, vector<128x512xf32>
    %cst_4 = arith.constant 0.000000e+00 : f32
    %17 = vector.broadcast %cst_4 : f32 to vector<128x512xf32>
    %18 = arith.select %14, %9, %17 : vector<128x512xi1>, vector<128x512xf32>
    %19 = math.absf %16 : vector<128x512xf32>
    %cst_5 = arith.constant 0.000000e+00 : f32
    %20 = vector.broadcast %cst_5 : f32 to vector<128x512xf32>
    %21 = arith.subf %20, %19 : vector<128x512xf32>
    %22 = math.exp %21 : vector<128x512xf32>
    %cst_6 = arith.constant 0.000000e+00 : f32
    %23 = vector.broadcast %cst_6 : f32 to vector<128x512xf32>
    %24 = arith.maximumf %16, %23 : vector<128x512xf32>
    %25 = arith.mulf %16, %18 : vector<128x512xf32>
    %26 = arith.subf %24, %25 : vector<128x512xf32>
    %27 = math.log1p %22 : vector<128x512xf32>
    %28 = arith.addf %26, %27 : vector<128x512xf32>
    %cst_7 = arith.constant 1.000000e+00 : f32
    %29 = vector.broadcast %cst_7 : f32 to vector<128x512xf32>
    %30 = arith.addf %29, %22 : vector<128x512xf32>
    %cst_8 = arith.constant 1.000000e+00 : f32
    %31 = vector.broadcast %cst_8 : f32 to vector<128x512xf32>
    %32 = arith.divf %31, %30 : vector<128x512xf32>
    %cst_9 = arith.constant 0.000000e+00 : f32
    %33 = vector.broadcast %cst_9 : f32 to vector<128x512xf32>
    %34 = arith.cmpf oge, %16, %33 : vector<128x512xf32>
    %35 = arith.mulf %22, %32 : vector<128x512xf32>
    %36 = arith.select %34, %32, %35 : vector<128x512xi1>, vector<128x512xf32>
    %c0_10 = arith.constant 0 : index
    %c0_11 = arith.constant 0 : index
    %37 = vector.load %arg4[%c0_10, %c0_11] : memref<8x512xf32, #tpu.memory_space<vmem>>, vector<8x512xf32>
    %38 = vector.shape_cast %28 : vector<128x512xf32> to vector<16x8x512xf32>
    %cst_12 = arith.constant dense<0.000000e+00> : vector<8x512xf32>
    %39 = vector.multi_reduction <add>, %38, %cst_12 [0] : vector<16x8x512xf32> to vector<8x512xf32>
    %40 = arith.addf %37, %39 : vector<8x512xf32>
    %c0_13 = arith.constant 0 : index
    %c0_14 = arith.constant 0 : index
    %41 = vector.load %arg4[%c0_13, %c0_14] : memref<8x512xf32, #tpu.memory_space<vmem>>, vector<8x512xf32>
    tpu.vector_store %arg4[%c0_13, %c0_14], %40 {strides = array<i32>} : memref<8x512xf32, #tpu.memory_space<vmem>>, vector<8x512xf32>,
    %c0_15 = arith.constant 0 : index
    %c0_16 = arith.constant 0 : index
    %42 = vector.load %arg5[%c0_15, %c0_16] : memref<8x512xf32, #tpu.memory_space<vmem>>, vector<8x512xf32>
    %43 = arith.mulf %36, %18 : vector<128x512xf32>
    %44 = vector.shape_cast %43 : vector<128x512xf32> to vector<16x8x512xf32>
    %cst_17 = arith.constant dense<0.000000e+00> : vector<8x512xf32>
    %45 = vector.multi_reduction <add>, %44, %cst_17 [0] : vector<16x8x512xf32> to vector<8x512xf32>
    %46 = arith.addf %42, %45 : vector<8x512xf32>
    %c0_18 = arith.constant 0 : index
    %c0_19 = arith.constant 0 : index
    %47 = vector.load %arg5[%c0_18, %c0_19] : memref<8x512xf32, #tpu.memory_space<vmem>>, vector<8x512xf32>
    tpu.vector_store %arg5[%c0_18, %c0_19], %46 {strides = array<i32>} : memref<8x512xf32, #tpu.memory_space<vmem>>, vector<8x512xf32>,
    %c0_20 = arith.constant 0 : index
    %c0_21 = arith.constant 0 : index
    %48 = vector.load %arg6[%c0_20, %c0_21] : memref<8x512xf32, #tpu.memory_space<vmem>>, vector<8x512xf32>
    %49 = arith.addf %36, %18 : vector<128x512xf32>
    %50 = vector.shape_cast %49 : vector<128x512xf32> to vector<16x8x512xf32>
    %cst_22 = arith.constant dense<0.000000e+00> : vector<8x512xf32>
    %51 = vector.multi_reduction <add>, %50, %cst_22 [0] : vector<16x8x512xf32> to vector<8x512xf32>
    %52 = arith.addf %48, %51 : vector<8x512xf32>
    %c0_23 = arith.constant 0 : index
    %c0_24 = arith.constant 0 : index
    %53 = vector.load %arg6[%c0_23, %c0_24] : memref<8x512xf32, #tpu.memory_space<vmem>>, vector<8x512xf32>
    tpu.vector_store %arg6[%c0_23, %c0_24], %52 {strides = array<i32>} : memref<8x512xf32, #tpu.memory_space<vmem>>, vector<8x512xf32>,
    %c1_i32_25 = arith.constant 1 : i32
    %c0_i32_26 = arith.constant 0 : i32
    %54 = arith.cmpi eq, %arg0, %c0_i32_26 : i32
    %55 = arith.extui %54 : i1 to i32
    %c0_i32_27 = arith.constant 0 : i32
    %56 = arith.cmpi ne, %55, %c0_i32_27 : i32
    scf.if %56 {
      %c0_28 = arith.constant 0 : index
      %c0_29 = arith.constant 0 : index
      %57 = vector.load %arg4[%c0_28, %c0_29] : memref<8x512xf32, #tpu.memory_space<vmem>>, vector<8x512xf32>
      %58 = vector.shape_cast %57 : vector<8x512xf32> to vector<1x8x512xf32>
      %cst_30 = arith.constant dense<0.000000e+00> : vector<1xf32>
      %59 = vector.multi_reduction <add>, %58, %cst_30 [1, 2] : vector<1x8x512xf32> to vector<1xf32>
      %60 = vector.shape_cast %59 : vector<1xf32> to vector<1x1x1xf32>
      %61 = vector.extract %60[0, 0, 0] : f32 from vector<1x1x1xf32>
      %c0_31 = arith.constant 0 : index
      %c0_32 = arith.constant 0 : index
      %62 = vector.load %arg5[%c0_31, %c0_32] : memref<8x512xf32, #tpu.memory_space<vmem>>, vector<8x512xf32>
      %63 = vector.shape_cast %62 : vector<8x512xf32> to vector<1x8x512xf32>
      %cst_33 = arith.constant dense<0.000000e+00> : vector<1xf32>
      %64 = vector.multi_reduction <add>, %63, %cst_33 [1, 2] : vector<1x8x512xf32> to vector<1xf32>
      %65 = vector.shape_cast %64 : vector<1xf32> to vector<1x1x1xf32>
      %66 = vector.extract %65[0, 0, 0] : f32 from vector<1x1x1xf32>
      %c0_34 = arith.constant 0 : index
      %c0_35 = arith.constant 0 : index
      %67 = vector.load %arg6[%c0_34, %c0_35] : memref<8x512xf32, #tpu.memory_space<vmem>>, vector<8x512xf32>
      %68 = vector.shape_cast %67 : vector<8x512xf32> to vector<1x8x512xf32>
      %cst_36 = arith.constant dense<0.000000e+00> : vector<1xf32>
      %69 = vector.multi_reduction <add>, %68, %cst_36 [1, 2] : vector<1x8x512xf32> to vector<1xf32>
      %70 = vector.shape_cast %69 : vector<1xf32> to vector<1x1x1xf32>
      %71 = vector.extract %70[0, 0, 0] : f32 from vector<1x1x1xf32>
      %72 = tpu.iota {dimensions = array<i32: 0>} : vector<8x128xi32>
      %73 = tpu.iota {dimensions = array<i32: 1>} : vector<8x128xi32>
      %c0_i32_37 = arith.constant 0 : i32
      %74 = vector.broadcast %c0_i32_37 : i32 to vector<8x128xi32>
      %75 = arith.cmpi eq, %72, %74 : vector<8x128xi32>
      %c0_i32_38 = arith.constant 0 : i32
      %76 = vector.broadcast %c0_i32_38 : i32 to vector<8x128xi32>
      %77 = arith.cmpi eq, %73, %76 : vector<8x128xi32>
      %78 = arith.andi %75, %77 : vector<8x128xi1>
      %cst_39 = arith.constant 0.000000e+00 : f32
      %79 = vector.broadcast %61 : f32 to vector<8x128xf32>
      %80 = vector.broadcast %cst_39 : f32 to vector<8x128xf32>
      %81 = arith.select %78, %79, %80 : vector<8x128xi1>, vector<8x128xf32>
      %c0_i32_40 = arith.constant 0 : i32
      %82 = vector.broadcast %c0_i32_40 : i32 to vector<8x128xi32>
      %83 = arith.cmpi eq, %72, %82 : vector<8x128xi32>
      %c1_i32_41 = arith.constant 1 : i32
      %84 = vector.broadcast %c1_i32_41 : i32 to vector<8x128xi32>
      %85 = arith.cmpi eq, %73, %84 : vector<8x128xi32>
      %86 = arith.andi %83, %85 : vector<8x128xi1>
      %87 = vector.broadcast %66 : f32 to vector<8x128xf32>
      %88 = arith.select %86, %87, %81 : vector<8x128xi1>, vector<8x128xf32>
      %c0_i32_42 = arith.constant 0 : i32
      %89 = vector.broadcast %c0_i32_42 : i32 to vector<8x128xi32>
      %90 = arith.cmpi eq, %72, %89 : vector<8x128xi32>
      %c2_i32 = arith.constant 2 : i32
      %91 = vector.broadcast %c2_i32 : i32 to vector<8x128xi32>
      %92 = arith.cmpi eq, %73, %91 : vector<8x128xi32>
      %93 = arith.andi %90, %92 : vector<8x128xi1>
      %94 = vector.broadcast %71 : f32 to vector<8x128xf32>
      %95 = arith.select %93, %94, %88 : vector<8x128xi1>, vector<8x128xf32>
      %c0_43 = arith.constant 0 : index
      %c0_44 = arith.constant 0 : index
      %96 = vector.load %arg3[%c0_43, %c0_44] : memref<8x128xf32, #tpu.memory_space<vmem>>, vector<8x128xf32>
      tpu.vector_store %arg3[%c0_43, %c0_44], %95 {strides = array<i32>} : memref<8x128xf32, #tpu.memory_space<vmem>>, vector<8x128xf32>,
    } else {
    }
    return
  }
  func.func @transform_0(%arg0: i32) -> (i32, i32) {
    %c0_i32 = arith.constant 0 : i32
    %c0_i32_0 = arith.constant 0 : i32
    return %arg0, %c0_i32 : i32, i32
  }
  func.func @transform_1(%arg0: i32) -> (i32, i32) {
    %c0_i32 = arith.constant 0 : i32
    %c0_i32_0 = arith.constant 0 : i32
    return %arg0, %c0_i32 : i32, i32
  }
  func.func @transform_2(%arg0: i32) -> (i32, i32) {
    %c0_i32 = arith.constant 0 : i32
    %c0_i32_0 = arith.constant 0 : i32
    %c0_i32_1 = arith.constant 0 : i32
    return %c0_i32, %c0_i32_0 : i32, i32
  }
}

</mosaic_0001>

<bundles_post_ra>
// kernel: tpu_custom_call.1
= control target key start
LH: loop header
LB: loop body
LE: loop exit
PB: predicated region body
PF: predicated region fallthrough
CT: control target
= control target key end

     0   :  { %7 = vsyncpa [#allocation6], 0  ;;  %s5186_s0 = inlined_call_operand.hbm [shape: f32[1,512], index: 0, kind: input, shape index: {}]   ;;  %s5187_s1 = inlined_call_operand.hbm [shape: f32[1,512], index: 1, kind: input, shape index: {}]   ;;  %s5188_s2 = inlined_call_operand.hbm [shape: f32[8,128], index: 2, kind: output, shape index: {}]  }
   0x1   :  { %8 = vsyncpa [#allocation9], 0 }
   0x2   :  { %9 = vsyncpa [#allocation7], 0 }
   0x3   :  { %14 = vsyncadd [#allocation6], 8128  ;;  %s5053_s9 = smov [#allocation5]  }
   0x4   :  { %s15_s10 = sshll.u32 %s5053_s9, 4  ;;  %s16_s10 = int_to_ptr.vmem [resolvable:$true] %s15_s10 }
   0x5   :  { %s4995_s11 = scalar_lea.vmem %s16_s10, 64  ;;  %s4999_s12 = scalar_lea.vmem %s16_s10, 8192 }
   0x6   :  { %p4996_p0 = scmp.ne.s32.totalorder %s16_s10, %s4995_s11  ;;  %p5000_p1 = scmp.lt.s32.totalorder %s16_s10, %s16_s10 }
   0x7   :  { %p5001_p2 = scmp.lt.s32.totalorder %s4999_s12, %s4995_s11 }
   0x9   :  { %p5002_p3 = por %p5001_p2, %p5000_p1 }
   0xb   :  { %p5003_p4 = pnand %p5002_p3, %p4996_p0 }
   0xd   :  { %5006 = shalt.err (!%p5003_p4)
}
   0xe   :  { %s5054_s13 = smov 64   ;;  %s5055_s14 = smov 4  }
   0xf   :  { %21 = dma.hbm_to_vmem [thread:$0]  %s5186_s0, 64, %s16_s10, [#allocation6], %s5054_s13, %s5054_s13, %s5055_s14  }
  0x10   :  { %26 = vsyncadd [#allocation9], 8128  ;;  %s5056_s17 = smov [#allocation8]  }
  0x11   :  { %s27_s18 = sshll.u32 %s5056_s17, 4  ;;  %s28_s18 = int_to_ptr.vmem [resolvable:$true] %s27_s18 }
  0x12   :  { %s5015_s19 = scalar_lea.vmem %s28_s18, 64  ;;  %s5019_s20 = scalar_lea.vmem %s28_s18, 8192 }
  0x13   :  { %p5016_p5 = scmp.ne.s32.totalorder %s28_s18, %s5015_s19  ;;  %p5020_p6 = scmp.lt.s32.totalorder %s28_s18, %s28_s18 }
  0x14   :  { %p5021_p7 = scmp.lt.s32.totalorder %s5019_s20, %s5015_s19 }
  0x16   :  { %p5022_p8 = por %p5021_p7, %p5020_p6 }
  0x18   :  { %p5023_p9 = pnand %p5022_p8, %p5016_p5 }
  0x1a   :  { %5026 = shalt.err (!%p5023_p9)
}
  0x1b   :  { %33 = dma.hbm_to_vmem [thread:$0]  %s5187_s1, 64, %s28_s18, [#allocation9], %s5054_s13, %s5054_s13, %s5055_s14  }
  0x1c   :  { %5047 = dma.done.wait [#allocation6], 8192  }
  0x1d   :  { %5048 = vsyncadd [#allocation6], 4294959104 }
  0x1e   :  { %5049 = dma.done.wait [#allocation9], 8192  }
  0x1f   :  { %5050 = vsyncadd [#allocation9], 4294959104  ;;  %v56_v0 = vlaneseq  ;;  %v5057_v1 = vmov 1966171168   ;;  %s5058_s1 = smov [#allocation10]  }
  0x20   :  { %v481_v2 = vunpack.c.l.s4 %v5057_v1  ;;  %v4979_v6 = vld.sshfl [vmem:[#allocation5] sm:$0xff pattern:$0x75316420]  ;;  %v4980_v7 = vld.sshfl [vmem:[#allocation5 + $0x8] sm:$0xff pattern:$0x75316420] }
  0x21   :  { %v5081_v3 = vshrl.u32 %v56_v0, 7  ;;  %v4981_v8 = vld.sshfl [vmem:[#allocation5 + $0x10] sm:$0xff pattern:$0x75316420]  ;;  %v508_v10 = vcombine.low %v4979_v6, %v4980_v7  ;;  %v509_v11 = vcombine.high %v4979_v6, %v4980_v7  ;;  %s4925_s23 = sshll.u32 %s5058_s1, 4  ;;  %s4926_s23 = int_to_ptr.vmem [resolvable:$true] %s4925_s23 }
  0x22   :  { %v482_v4 = vunpack.c.0.s8 %v481_v2  ;;  %v4982_v9 = vld.sshfl [vmem:[#allocation5 + $0x18] sm:$0xff pattern:$0x75316420]  ;;  %v4983_v37 = vld.sshfl [vmem:[#allocation8] sm:$0xff pattern:$0x75316420]  ;;  %p5032_p11 = scmp.lt.s32.totalorder %s4926_s23, %s4926_s23 }
  0x23   :  { %v510_v12 = vcombine.low %v4981_v8, %v4982_v9  ;;  %v511_v13 = vcombine.high %v4981_v8, %v4982_v9  ;;  %vm332_vm0 = vcmp.lt.s32.totalorder %v5081_v3, 1  ;;  %v4984_v39 = vld.sshfl [vmem:[#allocation8 + $0x8] sm:$0xff pattern:$0x75316420]  ;;  %vm4905_vm9 = vcmp.eq.s32.totalorder %v5081_v3, 0  ;;  %s5027_s26 = scalar_lea.vmem %s4926_s23, 128 }
  0x24   :  { %v485_v5 = vsub.s32 %v482_v4, %v5081_v3  ;;  %v4985_v40 = vld.sshfl [vmem:[#allocation8 + $0x10] sm:$0xff pattern:$0x75316420]  ;;  %v4986_v41 = vld.sshfl [vmem:[#allocation8 + $0x18] sm:$0xff pattern:$0x75316420]  ;;  %v1852_v42 = vcombine.low %v4983_v37, %v4984_v39  ;;  %v1853_v43 = vcombine.high %v4983_v37, %v4984_v39  ;;  %p5028_p10 = scmp.ne.s32.totalorder %s4926_s23, %s5027_s26  ;;  %p5033_p12 = scmp.lt.s32.totalorder %s5027_s26, %s5027_s26 }
  0x25   :  { %v1854_v44 = vcombine.low %v4985_v40, %v4986_v41  ;;  %v1855_v45 = vcombine.high %v4985_v40, %v4986_v41 }
  0x26   :  { %v518_v14 = vrot.slane %v508_v10, %v485_v5  ;;  %v525_v15 = vrot.slane %v509_v11, %v485_v5  ;;  %v532_v16 = vrot.slane %v510_v12, %v485_v5  ;;  %v539_v17 = vrot.slane %v511_v13, %v485_v5  ;;  %p5034_p13 = por %p5033_p12, %p5032_p11 }
  0x27   :  { %v1862_v47 = vrot.slane %v1852_v42, %v485_v5  ;;  %v1869_v48 = vrot.slane %v1853_v43, %v485_v5  ;;  %v1876_v49 = vrot.slane %v1854_v44, %v485_v5  ;;  %v1883_v50 = vrot.slane %v1855_v45, %v485_v5 }
  0x28   :  { %v540_v18 = vcombine.low %v518_v14, %v532_v16  ;;  %v541_v19 = vcombine.high %v518_v14, %v532_v16  ;;  %v542_v20 = vcombine.low %v525_v15, %v539_v17  ;;  %v543_v21 = vcombine.high %v525_v15, %v539_v17  ;;  %p5035_p0 = pnand %p5034_p13, %p5028_p10 }
  0x29   :  { %v1884_v57 = vcombine.low %v1862_v47, %v1876_v49  ;;  %v1886_v58 = vcombine.low %v1869_v48, %v1883_v50  ;;  %v1885_v60 = vcombine.high %v1862_v47, %v1876_v49  ;;  %v1887_v61 = vcombine.high %v1869_v48, %v1883_v50 }
  0x2a   :  { %v5087_v22 = vsel %vm332_vm0, %v540_v18, -10000.0  ;;  %v5091_v23 = vsel %vm332_vm0, %v542_v20, -10000.0  ;;  %v5095_v24 = vsel %vm332_vm0, %v541_v19, -10000.0  ;;  %v5099_v25 = vsel %vm332_vm0, %v543_v21, -10000.0 }
  0x2b   :  { %v3036_v26 = vand.u32 2147483647, %v5087_v22  ;;  %v3037_v27 = vand.u32 2147483647, %v5091_v23  ;;  %v3038_v28 = vand.u32 2147483647, %v5095_v24 }
  0x2c   :  { %v3039_v29 = vand.u32 2147483647, %v5099_v25  ;;  %v2972_v62 = vsel %vm332_vm0, %v1884_v57, 0.0  ;;  %v2973_v63 = vsel %vm332_vm0, %v1886_v58, 0.0  ;;  %v5117_v1 = vsel %vm332_vm0, %v1885_v60, 0.0 }
  0x2d   :  { %v3100_v30 = vsub.f32 0.0, %v3036_v26  ;;  %v3101_v31 = vsub.f32 0.0, %v3037_v27  ;;  %v3102_v32 = vsub.f32 0.0, %v3038_v28  ;;  %v5121_v2 = vsel %vm332_vm0, %v1887_v61, 0.0 }
  0x2e   :  { %v3103_v33 = vsub.f32 0.0, %v3039_v29  ;;  %v3292_v5 = vmax.f32 %v5087_v22, 0.0  ;;  %v3293_v7 = vmax.f32 %v5091_v23, 0.0  ;;  %v3294_v8 = vmax.f32 %v5095_v24, 0.0 }
  0x2f   :  { %v3164_v34 = vmul.f32 1.442695, %v3100_v30  ;;  %v3166_v35 = vmul.f32 1.442695, %v3101_v31  ;;  %v3168_v36 = vmul.f32 1.442695, %v3102_v32  ;;  %v3356_v11 = vmul.f32 %v2972_v62, %v5087_v22 }
  0x30   :  { %v3170_v38 = vmul.f32 1.442695, %v3103_v33  ;;  %v3295_v9 = vmax.f32 %v5099_v25, 0.0  ;;  %v3357_v12 = vmul.f32 %v2973_v63, %v5091_v23  ;;  %v3358_v13 = vmul.f32 %v5117_v1, %v5095_v24 }
  0x31   :  { %4955 = vpow2.f32 %v3164_v34  ;;  %v3359_v14 = vmul.f32 %v5121_v2, %v5099_v25  ;;  %vm4316_vm1 = vcmp.ge.f32.partialorder %v5087_v22, 0.0  ;;  %vm4317_vm2 = vcmp.ge.f32.partialorder %v5091_v23, 0.0 }
  0x32   :  { %4957 = vpow2.f32 %v3166_v35  ;;  %vm4318_vm3 = vcmp.ge.f32.partialorder %v5095_v24, 0.0  ;;  %vm4319_vm4 = vcmp.ge.f32.partialorder %v5099_v25, 0.0  ;;  %v3420_v28 = vsub.f32 %v3292_v5, %v3356_v11 }
  0x33   :  { %4959 = vpow2.f32 %v3168_v36  ;;  %v3421_v29 = vsub.f32 %v3293_v7, %v3357_v12  ;;  %v3422_v30 = vsub.f32 %v3294_v8, %v3358_v13  ;;  %v3423_v31 = vsub.f32 %v3295_v9, %v3359_v14 }
  0x34   :  { %4961 = vpow2.f32 %v3170_v38 }
  0x3e   :  { %v4956_v46 = vpop.eup %4955 }
  0x3f   :  { %v4958_v51 = vpop.eup %4957  ;;  %v3484_v52 = vadd.f32 1.0, %v4956_v46  ;;  %v3487_v4 = vmul.f32 -0.5, %v4956_v46  ;;  %v3490_v16 = vand.u32 2147483647, %v4956_v46 }
  0x40   :  { %v5105_v53 = vpop.eup %4959  ;;  %v3493_v54 = vadd.f32 1.0, %v4958_v51  ;;  %v3496_v6 = vmul.f32 -0.5, %v4958_v51  ;;  %v3499_v17 = vand.u32 2147483647, %v4958_v51 }
  0x41   :  { %v5107_v55 = vpop.eup %4961  ;;  %v3502_v56 = vadd.f32 1.0, %v5105_v53  ;;  %4963 = vrcp.f32 %v3484_v52  ;;  %v3505_v10 = vmul.f32 -0.5, %v5105_v53  ;;  %v3488_v15 = vadd.f32 1.0, %v3487_v4 }
  0x42   :  { %v3511_v59 = vadd.f32 1.0, %v5107_v55  ;;  %4965 = vrcp.f32 %v3493_v54  ;;  %v3497_v18 = vadd.f32 1.0, %v3496_v6  ;;  %v3508_v19 = vand.u32 2147483647, %v5105_v53 }
  0x43   :  { %4967 = vrcp.f32 %v3502_v56  ;;  %v3514_v20 = vmul.f32 -0.5, %v5107_v55  ;;  %v3506_v21 = vadd.f32 1.0, %v3505_v10  ;;  %v3517_v26 = vand.u32 2147483647, %v5107_v55 }
  0x44   :  { %4969 = vrcp.f32 %v3511_v59  ;;  %v3489_v34 = vmul.f32 %v4956_v46, %v3488_v15  ;;  %vm5141_vm5 = vcmp.lt.f32.partialorder %v3490_v16, 0.0004427343  ;;  %vm5145_vm6 = vcmp.lt.f32.partialorder %v3499_v17, 0.0004427343 }
  0x45   :  { %4971 = vlog2.f32 %v3484_v52  ;;  %v3498_v39 = vmul.f32 %v4958_v51, %v3497_v18  ;;  %vm5149_vm7 = vcmp.lt.f32.partialorder %v3508_v19, 0.0004427343  ;;  %v3515_v41 = vadd.f32 1.0, %v3514_v20 }
  0x46   :  { %4973 = vlog2.f32 %v3493_v54  ;;  %v3507_v45 = vmul.f32 %v5105_v53, %v3506_v21  ;;  %vm5157_vm8 = vcmp.lt.f32.partialorder %v3517_v26, 0.0004427343 }
  0x47   :  { %4975 = vlog2.f32 %v3502_v56  ;;  %v3516_v61 = vmul.f32 %v5107_v55, %v3515_v41 }
  0x48   :  { %4977 = vlog2.f32 %v3511_v59 }
  0x4e   :  { %v4964_v27 = vpop.eup %4963 }
  0x4f   :  { %v4966_v32 = vpop.eup %4965  ;;  %v4380_v33 = vmul.f32 %v4964_v27, %v4956_v46 }
  0x50   :  { %v4968_v37 = vpop.eup %4967  ;;  %v4381_v38 = vmul.f32 %v4966_v32, %v4958_v51 }
  0x51   :  { %v4970_v42 = vpop.eup %4969  ;;  %v4382_v43 = vmul.f32 %v4968_v37, %v5105_v53  ;;  %v4444_v44 = vsel %vm4316_vm1, %v4964_v27, %v4380_v33 }
  0x52   :  { %v4972_v47 = vpop.eup %4971  ;;  %v4383_v48 = vmul.f32 %v4970_v42, %v5107_v55  ;;  %v4445_v49 = vsel %vm4317_vm2, %v4966_v32, %v4381_v38  ;;  %v4720_v50 = vadd.f32 %v4444_v44, %v2972_v62  ;;  %v4584_v51 = vmul.f32 %v4444_v44, %v2972_v62 }
  0x53   :  { %v4974_v52 = vpop.eup %4973  ;;  %v4446_v54 = vsel %vm4318_vm3, %v4968_v37, %v4382_v43  ;;  %v4721_v22 = vadd.f32 %v4445_v49, %v2973_v63  ;;  %v3486_v56 = vmul.f32 0.6931472, %v4972_v47  ;;  %v4585_v57 = vmul.f32 %v4445_v49, %v2973_v63 }
  0x54   :  { %v4976_v53 = vpop.eup %4975  ;;  %v4447_v58 = vsel %vm4319_vm4, %v4970_v42, %v4383_v48  ;;  %v4722_v59 = vadd.f32 %v4446_v54, %v5117_v1  ;;  %v3495_v60 = vmul.f32 0.6931472, %v4974_v52  ;;  %v4586_v25 = vmul.f32 %v4446_v54, %v5117_v1 }
  0x55   :  { %v4978_v23 = vpop.eup %4977  ;;  %v4723_v4 = vadd.f32 %v4447_v58, %v5121_v2  ;;  %v4891_v62 = vadd.f32 %v4721_v22, %v4720_v50  ;;  %v3492_v24 = vsel %vm5141_vm5, %v3489_v34, %v3486_v56  ;;  %v3504_v5 = vmul.f32 0.6931472, %v4976_v53 }
  0x56   :  { %v3501_v63 = vsel %vm5145_vm6, %v3498_v39, %v3495_v60  ;;  %v3513_v6 = vmul.f32 0.6931472, %v4978_v23  ;;  %v4060_v7 = vadd.f32 %v3492_v24, %v3420_v28  ;;  %v4875_v10 = vadd.f32 %v4585_v57, %v4584_v51 }
  0x57   :  { %v4892_v8 = vadd.f32 %v4891_v62, %v4722_v59  ;;  %v3510_v9 = vsel %vm5149_vm7, %v3507_v45, %v3504_v5  ;;  %v4061_v55 = vadd.f32 %v3501_v63, %v3421_v29  ;;  %v4587_v17 = vmul.f32 %v4447_v58, %v5121_v2 }
  0x58   :  { %v3519_v11 = vsel %vm5157_vm8, %v3516_v61, %v3513_v6  ;;  %v4062_v12 = vadd.f32 %v3510_v9, %v3422_v30  ;;  %v4876_v18 = vadd.f32 %v4875_v10, %v4586_v25  ;;  %v4904_v44 = vand.u32 127, %v56_v0 }
  0x59   :  { %v4893_v13 = vadd.f32 %v4892_v8, %v4723_v4  ;;  %v4063_v14 = vadd.f32 %v3519_v11, %v3423_v31  ;;  %v4859_v15 = vadd.f32 %v4061_v55, %v4060_v7 }
  0x5a   :  { %v4877_v1 = vadd.f32 %v4876_v18, %v4587_v17  ;;  %vm4906_vm10 = vcmp.eq.s32.totalorder %v4904_v44, 0  ;;  %vm4910_vm11 = vcmp.eq.s32.totalorder %v4904_v44, 1  ;;  %vm4914_vm12 = vcmp.eq.s32.totalorder %v4904_v44, 2 }
  0x5b   :  { %4894 = vadd.xlane.f32.xlu1 %v4893_v13  ;;  %v4860_v16 = vadd.f32 %v4859_v15, %v4062_v12  ;;  %vm4907_vm13 = vmand %vm4905_vm9, %vm4906_vm10 }
  0x5c   :  { %vm4911_vm14 = vmand %vm4905_vm9, %vm4910_vm11 }
  0x5d   :  { %v4861_v19 = vadd.f32 %v4860_v16, %v4063_v14  ;;  %vm4915_vm15 = vmand %vm4905_vm9, %vm4914_vm12 }
  0x5f   :  { %4862 = vadd.xlane.f32.xlu0 %v4861_v19 }
  0x63   :  { %4878 = vadd.xlane.f32.xlu0 %v4877_v1 }
  0xe4   :  { %v4895_v20 = vpop.xlane.xlu1 %4894 }
  0xe5   :  { %v4896_v21 = vrot.slane %v4895_v20, 4 }
  0xe7   :  { %v4897_v26 = vadd.f32 %v4896_v21, %v4895_v20 }
  0xe8   :  { %v4863_v27 = vpop.xlane.xlu0 %4862 }
  0xe9   :  { %v4864_v28 = vrot.slane %v4863_v27, 4  ;;  %v4898_v32 = vrot.slane %v4897_v26, 2 }
  0xeb   :  { %v4865_v29 = vadd.f32 %v4864_v28, %v4863_v27  ;;  %v4899_v36 = vadd.f32 %v4898_v32, %v4897_v26 }
  0xec   :  { %v4879_v30 = vpop.xlane.xlu0 %4878 }
  0xed   :  { %v4866_v33 = vrot.slane %v4865_v29, 2  ;;  %v4880_v31 = vrot.slane %v4879_v30, 4  ;;  %v4900_v40 = vrot.slane %v4899_v36, 1 }
  0xef   :  { %v4881_v34 = vadd.f32 %v4880_v31, %v4879_v30  ;;  %v4867_v35 = vadd.f32 %v4866_v33, %v4865_v29  ;;  %v4901_v43 = vadd.f32 %v4900_v40, %v4899_v36 }
  0xf1   :  { %v4882_v37 = vrot.slane %v4881_v34, 2  ;;  %v4868_v2 = vrot.slane %v4867_v35, 1 }
  0xf3   :  { %v4883_v38 = vadd.f32 %v4882_v37, %v4881_v34  ;;  %v4869_v39 = vadd.f32 %v4868_v2, %v4867_v35 }
  0xf5   :  { %4935 = vpush %v4869_v39  ;;  %v4884_v41 = vrot.slane %v4883_v38, 1 }
  0xf7   :  { %v4885_v42 = vadd.f32 %v4884_v41, %v4883_v38 }
  0xf9   :  { %4937 = vpush %v4885_v42 }
  0xfa   :  { %4939 = vpush %v4901_v43 }
 0x126   :  { %s4936_s0 = spop %4935 }
 0x127   :  { %v4908_v45 = vstv %s4936_s0 }
 0x128   :  { %v4909_v46 = vsel %vm4907_vm13, %v4908_v45, 0.0 }
 0x12a   :  { %s4938_s24 = spop %4937 }
 0x12b   :  { %v4912_v47 = vstv %s4938_s24  ;;  %s4940_s25 = spop %4939 }
 0x12c   :  { %v4913_v48 = vsel %vm4911_vm14, %v4912_v47, %v4909_v46  ;;  %v4916_v49 = vstv %s4940_s25 }
 0x12d   :  { %v4917_v0 = vsel %vm4915_vm15, %v4916_v49, %v4913_v48 }
 0x12e   :  { %4918 = vst [vmem:[#allocation10] sm:$0xff] %v4917_v0 }
 0x12f   :  { %5038 = shalt.err (!%p5035_p0)
}
 0x130   :  { %4928 = dma.vmem_to_hbm [thread:$0]  %s4926_s23, 128, %s5188_s2, [#allocation7]  }
 0x131   :  { %5051 = dma.done.wait [#allocation7], 128  }
 0x132   :  { %5052 = vsyncadd [#allocation7], 4294967168 }
 0x133   :  { %4932 = vsyncpa [#allocation6], 1 }
 0x134   :  { %4933 = vsyncpa [#allocation9], 1 }
 0x135   :  { %4934 = vsyncpa [#allocation7], 1 }

</bundles_post_ra>
